<compile_context>
chip_gen: v7x
topology: tpu7x:2x2x1
jax: 0.10.0
libtpu: 0.0.40
codegen_flags: <defaults>
</compile_context>

<pallas_src>
import jax
import jax.numpy as jnp
from jax.experimental import pallas as pl
from jax.experimental.pallas import tpu as pltpu

_SHIFT = -6.9077542789816375   # == alpha / beta, independent of beta
_LANES = 128
_SUBLANES = 8
_MAX_TILE_ROWS = 4096          # 4096 x 128 x 4B = 2 MiB per f32 tile


def _translated_sigmoid_kernel(inv_beta_ref, x_ref, o_ref):
    # inv_beta_ref: SMEM scalar (1,), x_ref/o_ref: VMEM tiles.
    inv_beta = inv_beta_ref[0]
    # Compute in f32 (cast is a no-op for f32 inputs).
    z = x_ref[...].astype(jnp.float32) * inv_beta + _SHIFT
    # sigmoid(z) = 0.5 * (tanh(z/2) + 1): single EUP transcendental per vreg.
    o_ref[...] = (0.5 * jnp.tanh(0.5 * z) + 0.5).astype(o_ref.dtype)


def translated_sigmoid(x: jax.Array, beta_param: jax.Array) -> jax.Array:
    """Pallas TPU implementation of translatedSigmoid.forward.

    x: any-shape float array (e.g. NCHW activations).
    beta_param: shape (1,) learnable scalar (the raw nn.Parameter, pre-softplus).
    """
    orig_shape = x.shape
    orig_dtype = x.dtype

    # Scalar prep hoisted out of the kernel (numerically-stable softplus).
    beta = jax.nn.softplus(beta_param.astype(jnp.float32).reshape(-1)[0])
    inv_beta = (1.0 / beta).reshape(1)  # (1,) f32 SMEM scalar

    # Flatten to a lane-dense 2D slab (rows, 128). Pad only if needed.
    flat = x.reshape(-1)
    n = flat.shape[0]
    tile_align = _SUBLANES * _LANES
    pad = (-n) % tile_align
    if pad:
        flat = jnp.pad(flat, (0, pad))
    x2d = flat.reshape(-1, _LANES)
    rows = x2d.shape[0]  # multiple of 8

    # Choose tile rows: as big as allowed, but keep >= 2 grid steps when there
    # is enough work so both v7x TensorCores get fed via the parallel axis.
    tile_rows = min(_MAX_TILE_ROWS, rows)
    num_steps = pl.cdiv(rows, tile_rows)
    if num_steps == 1 and rows >= 2 * _SUBLANES:
        tile_rows = ((rows // 2 + _SUBLANES - 1) // _SUBLANES) * _SUBLANES
        num_steps = pl.cdiv(rows, tile_rows)

    out2d = pl.pallas_call(
        _translated_sigmoid_kernel,
        out_shape=jax.ShapeDtypeStruct((rows, _LANES), orig_dtype),
        grid_spec=pltpu.PrefetchScalarGridSpec(
            num_scalar_prefetch=0,
            grid=(num_steps,),
            in_specs=[
                pl.BlockSpec(memory_space=pltpu.MemorySpace.SMEM),   # 1/beta scalar
                pl.BlockSpec((tile_rows, _LANES), lambda i: (i, 0)),
            ],
            out_specs=pl.BlockSpec((tile_rows, _LANES), lambda i: (i, 0)),
        ),
        compiler_params=pltpu.CompilerParams(
            dimension_semantics=("parallel",),
        ),
    )(inv_beta, x2d)

    out = out2d.reshape(-1)
    if pad:
        out = out[:n]
    return out.reshape(orig_shape)


def translated_sigmoid_ref(x, beta_param):
    beta = jax.nn.softplus(beta_param[0])
    alpha = -beta * 6.9077542789816375
    return jax.nn.sigmoid((x + alpha) / beta)


if __name__ == "__main__":
    key = jax.random.PRNGKey(0)
    # Small NCHW activation, consistent with how translatedSigmoid is used in the VAE.
    x = jax.random.normal(key, (2, 4, 16, 16), dtype=jnp.float32) * 3.0

    # Deterministic parameter init, matching nn.Parameter(torch.tensor([-3.5])).
    beta_param = jnp.array([-3.5], dtype=jnp.float32)

    out = translated_sigmoid(x, beta_param)
    out = jax.block_until_ready(out)

    ref = translated_sigmoid_ref(x, beta_param)
    assert out.shape == x.shape and out.dtype == x.dtype
    # Tolerance accounts for mul-by-reciprocal vs divide and tanh-form sigmoid.
    assert jnp.allclose(out, ref, atol=1e-5, rtol=1e-5), "mismatch vs reference"

    print("KERNEL_OK")
</pallas_src>

<mosaic_0001>
module attributes {stable_mosaic.version = 11 : i64} {
  func.func @_translated_sigmoid_kernel(%arg0: i32, %arg1: memref<1xf32, #tpu.memory_space<smem>>, %arg2: memref<8x128xf32, #tpu.memory_space<vmem>>, %arg3: memref<8x128xf32, #tpu.memory_space<vmem>>) attributes {dimension_semantics = [#tpu.dimension_semantics<parallel>], iteration_bounds = array<i64: 2>, scalar_prefetch = 0 : i64, scratch_operands = 0 : i64, tpu.core_type = #tpu.core_type<tc>, window_params = [{transform_indices = @transform_0, window_bounds = array<i64: 1>}, {transform_indices = @transform_1, window_bounds = array<i64: 8, 128>}, {transform_indices = @transform_2, window_bounds = array<i64: 8, 128>}]} {
    %c0 = arith.constant 0 : index
    %0 = memref.load %arg1[%c0] : memref<1xf32, #tpu.memory_space<smem>>
    %c0_0 = arith.constant 0 : index
    %c0_1 = arith.constant 0 : index
    %1 = vector.load %arg2[%c0_0, %c0_1] : memref<8x128xf32, #tpu.memory_space<vmem>>, vector<8x128xf32>
    %2 = vector.broadcast %0 : f32 to vector<8x128xf32>
    %3 = arith.mulf %1, %2 : vector<8x128xf32>
    %cst = arith.constant -6.90775442 : f32
    %4 = vector.broadcast %cst : f32 to vector<8x128xf32>
    %5 = arith.addf %3, %4 : vector<8x128xf32>
    %cst_2 = arith.constant 5.000000e-01 : f32
    %6 = vector.broadcast %cst_2 : f32 to vector<8x128xf32>
    %7 = arith.mulf %6, %5 : vector<8x128xf32>
    %8 = math.tanh %7 : vector<8x128xf32>
    %cst_3 = arith.constant 5.000000e-01 : f32
    %9 = vector.broadcast %cst_3 : f32 to vector<8x128xf32>
    %10 = arith.mulf %9, %8 : vector<8x128xf32>
    %cst_4 = arith.constant 5.000000e-01 : f32
    %11 = vector.broadcast %cst_4 : f32 to vector<8x128xf32>
    %12 = arith.addf %10, %11 : vector<8x128xf32>
    %c0_5 = arith.constant 0 : index
    %c0_6 = arith.constant 0 : index
    %13 = vector.load %arg3[%c0_5, %c0_6] : memref<8x128xf32, #tpu.memory_space<vmem>>, vector<8x128xf32>
    tpu.vector_store %arg3[%c0_5, %c0_6], %12 {strides = array<i32>} : memref<8x128xf32, #tpu.memory_space<vmem>>, vector<8x128xf32>,
    return
  }
  func.func @transform_0(%arg0: i32) -> i32 {
    %c0_i32 = arith.constant 0 : i32
    %c0_i32_0 = arith.constant 0 : i32
    return %c0_i32 : i32
  }
  func.func @transform_1(%arg0: i32) -> (i32, i32) {
    %c0_i32 = arith.constant 0 : i32
    %c0_i32_0 = arith.constant 0 : i32
    return %arg0, %c0_i32 : i32, i32
  }
  func.func @transform_2(%arg0: i32) -> (i32, i32) {
    %c0_i32 = arith.constant 0 : i32
    %c0_i32_0 = arith.constant 0 : i32
    return %arg0, %c0_i32 : i32, i32
  }
}

</mosaic_0001>

<bundles_post_ra>
// kernel: tpu_custom_call.1
= control target key start
LH: loop header
LB: loop body
LE: loop exit
PB: predicated region body
PF: predicated region fallthrough
CT: control target
= control target key end

     0   :  { %s593_s0 = inlined_call_operand.<no memory space> [shape: f32[1], index: 0, kind: input, shape index: {}]   ;;  %s594_s1 = inlined_call_operand.hbm [shape: f32[16,128], index: 1, kind: input, shape index: {}]   ;;  %s595_s2 = inlined_call_operand.hbm [shape: f32[16,128], index: 2, kind: output, shape index: {}]  }
   0x1   :  { %7 = sst [smem:[#allocation2]] %s593_s0 }
   0x2   :  { %8 = vsyncpa [#allocation4], 0 }
   0x3   :  { %10 = vsyncpa [#allocation4 + $0x1], 0 }
   0x4   :  { %11 = vsyncpa [#allocation5], 0 }
   0x5   :  { %13 = vsyncpa [#allocation5 + $0x1], 0  ;;  %s432_s11 = smov 0   ;;  %s434_s12 = smov 0  }
   0x6   :  { %s436_s13 = smov 0   ;;  %s438_s14 = smov 0  }
   0x7 LB: > { %s453_s0 = sadd.s32 4294967295, %s410_s14   ;;  %s254_s15 = sadd.s32 4294967294, %s410_s14   ;;  %s410_s14 = sphi %s438_s14, %s610_s14   ;;  %s406_s13 = sphi %s436_s13, %s609_s13   ;;  %s402_s12 = sphi %s434_s12, %s608_s12   ;;  %s398_s11 = sphi %s432_s11, %s607_s11  }
   0x8   : > { %s457_s16 = sadd.s32 1, %s410_s14   ;;  %s47_s17 = sadd.s32 1, %s406_s13 }
   0x9   : > { %s44_s18 = ssub.s32 %s410_s14, %s457_s16  ;;  %p54_p0 = scmp.ne.s32.totalorder %s406_s13, %s402_s12 }
   0xa   : > { %p45_p1 = scmp.eq.s32.totalorder %s44_s18, 0  ;;  %p55_p2 = scmp.eq.s32.totalorder %s410_s14, 0 }
   0xb   : > { %p60_p3 = scmp.ne.s32.totalorder %s402_s12, %s398_s11  ;;  %p61_p4 = scmp.eq.s32.totalorder %s453_s0, 0 }
   0xc   : > { %s469_s19 = scalar_select %p45_p1, %s406_s13, %s47_s17  }
   0xd   : > { %p471_p5 = por %p55_p2, %p54_p0  ;;  %p475_p6 = por %p61_p4, %p60_p3 }
   0xe   : > { %p84_p7 = scmp.eq.s32.totalorder %s453_s0, 1  ;;  %p90_p8 = scmp.eq.s32.totalorder %s254_s15, 1 }
   0xf   : > { %p278_p10 = scmp.lt.s32.totalorder %s410_s14, 2  ;;  %s113_s24 = sand.u32 1, %s406_s13  }
  0x10   : > { %p482_p11 = por %p84_p7, %p54_p0  ;;  %p486_p12 = por %p90_p8, %p60_p3 }
  0x11   : > { %s258_s25 = sshll.u32 %s410_s14, 7  ;;  %s257_s26 = sshll.u32 %s113_s24, 3 }
  0x12   : > { %s599_s22 = scalar_select %p482_p11, 1, 0 }
  0x13   : > { %s600_s23 = scalar_select %p486_p12, 1, 0 }
  0x14   : > { %s495_s29 = scalar_lea.hbm %s594_s1, %s258_s25  ;;  %s117_s30 = scalar_lea.vmem [#allocation3], %s257_s26 }
  0x15   : > { %s124_s3 = sshll.u32 %s117_s30, 4  ;;  %p499_p13 = pnand %p278_p10, %p471_p5  ;;  %s503_s3 = int_to_ptr.vmem [resolvable:$true] %s124_s3 }
  0x16   : > { %s114_s5 = scalar_lea.sflag [#allocation4], %s113_s24  ;;  %s314_s6 = scalar_lea.hbm %s495_s29, 128 }
  0x17   : > { %p315_p2 = scmp.ne.s32.totalorder %s495_s29, %s314_s6  ;;  %p316_p3 = pneg %p499_p13 }
  0x18   : > { %s319_s9 = scalar_lea.hbm %s594_s1, 256  ;;  %p320_p5 = scmp.lt.u32.totalorder %s495_s29, %s594_s1 }
  0x19   : > { %p317_p4 = pnand %p316_p3, %p315_p2  ;;  %p321_p8 = scmp.lt.u32.totalorder %s319_s9, %s314_s6 }
  0x1a   : > { %p323_p9 = scmp.lt.u32.totalorder %s314_s6, %s495_s29 }
  0x1b   : > { %p318_p7 = pneg %p317_p4  ;;  %p322_p10 = por %p321_p8, %p320_p5 }
  0x1d   : > { %p324_p0 = por %p323_p9, %p322_p10 }
  0x1f   : > { %p325_p1 = pnand %p324_p0, %p318_p7 }
  0x21   : > { %328 = shalt.err (!%p325_p1)
}
  0x22   : > { %s329_s17 = scalar_lea.vmem %s503_s3, 128  ;;  %s412_s18 = smov [#allocation3]  }
  0x23   : > { %p330_p2 = scmp.ne.s32.totalorder %s503_s3, %s329_s17  ;;  %s334_s20 = sshll.u32 %s412_s18, 4  ;;  %s335_s20 = int_to_ptr.vmem [resolvable:$false] %s334_s20 }
  0x24   : > { %s336_s24 = scalar_lea.vmem %s335_s20, 256  ;;  %p337_p11 = scmp.lt.s32.totalorder %s503_s3, %s335_s20 }
  0x25   : > { %p332_p4 = pnand %p330_p2, %p316_p3  ;;  %p338_p5 = scmp.lt.s32.totalorder %s336_s24, %s329_s17 }
  0x27   : > { %p333_p12 = pneg %p332_p4  ;;  %p339_p8 = por %p338_p5, %p337_p11 }
  0x29   : > { %p340_p9 = pnand %p339_p8, %p333_p12 }
  0x2b   : > { %343 = shalt.err (!%p340_p9)
}
  0x2c   : > { %273 = dma.hbm_to_vmem [thread:$0]  (!%p499_p13), %s495_s29, 128, %s503_s3, %s114_s5  }
  0x2d   : > { %p602_p0 = scmp.lt.s32.totalorder %s410_s14, 3  ;;  %p603_p1 = scmp.ge.s32.totalorder %s410_s14, 1 }
  0x2f   : > { %p130_p3 = pnand %p603_p1, %p602_p0 }
  0x30   : > { %s537_s25 = sand.u32 (!%p130_p3), 1, %s402_s12  }
  0x31   : > { %133 = sbr.rel (%p130_p3) target bundleno = 99 (0x63), region = 28  ;;  %s260_s26 = sshll.u32 (!%p130_p3), %s537_s25, 3 }
  0x32   : > { %s136_s27 = scalar_lea.sflag (!%p130_p3), [#allocation4], %s537_s25  ;;  %s139_s28 = scalar_lea.vmem (!%p130_p3), [#allocation3], %s260_s26 }
  0x38   : > { %389 = dma.done.wait (%p475_p6), %s136_s27, 128  }
  0x39   : > { %391 = vsyncadd (%p475_p6), %s136_s27, 4294967168  ;;  %s160_s29 = sld [smem:[#allocation2]]  ;;  %v161_v0 = vld [vmem:[%s139_s28] sm:$0xff]  ;;  %s159_s30 = scalar_lea.vmem [#allocation6], %s260_s26 }
  0x3a   : > { %s184_s3 = sshll.u32 %s159_s30, 4  ;;  %s263_s4 = sshll.u32 %s453_s0, 7  ;;  %s546_s3 = int_to_ptr.vmem [resolvable:$true] %s184_s3 }
  0x3b   : > { %s551_s6 = scalar_lea.hbm %s595_s2, %s263_s4  ;;  %s171_s7 = scalar_lea.sflag [#allocation5], %s537_s25 }
  0x3c   : > { %s344_s8 = scalar_lea.vmem %s546_s3, 128  ;;  %p604_p11 = scmp.ne.s32.totalorder %s599_s22, 0 }
  0x3d   : > { %p345_p6 = scmp.ne.s32.totalorder %s546_s3, %s344_s8  ;;  %s413_s0 = smov [#allocation6]  }
  0x3e   : > { %s348_s9 = sshll.u32 %s413_s0, 4  ;;  %s349_s9 = int_to_ptr.vmem [resolvable:$false] %s348_s9 }
  0x3f   : > { %v162_v1 = vstv %s160_s29  ;;  %p346_p12 = pnand %p345_p6, %p604_p11  ;;  %s350_s10 = scalar_lea.vmem %s349_s9, 256 }
  0x40   : > { %v163_v2 = vmul.f32 %v162_v1, %v161_v0  ;;  %p351_p7 = scmp.lt.s32.totalorder %s546_s3, %s349_s9  ;;  %p352_p10 = scmp.lt.s32.totalorder %s350_s10, %s344_s8 }
  0x41   : > { %p347_p13 = pneg %p346_p12 }
  0x42   : > { %v164_v3 = vadd.f32 -6.9077544, %v163_v2  ;;  %p353_p2 = por %p352_p10, %p351_p7 }
  0x44   : > { %v165_v4 = vmul.f32 0.5, %v164_v3  ;;  %p354_p4 = pnand %p353_p2, %p347_p13 }
  0x46   : > { %312 = vtanh.f32 %v165_v4 }
  0x50   : > { %v313_v5 = vpop.eup %312 }
  0x51   : > { %v167_v6 = vmul.f32 0.5, %v313_v5 }
  0x53   : > { %v168_v7 = vadd.f32 0.5, %v167_v6 }
  0x55   : > { %169 = vst [vmem:[%s159_s30] sm:$0xff] %v168_v7 }
  0x56   : > { %357 = shalt.err (!%p354_p4)
}
  0x57   : > { %s358_s15 = scalar_lea.hbm %s551_s6, 128  ;;  %s362_s20 = scalar_lea.hbm %s595_s2, 256 }
  0x58   : > { %p359_p5 = scmp.ne.s32.totalorder %s551_s6, %s358_s15  ;;  %p363_p0 = scmp.lt.u32.totalorder %s551_s6, %s595_s2 }
  0x59   : > { %p364_p1 = scmp.lt.u32.totalorder %s362_s20, %s358_s15  ;;  %p366_p6 = scmp.lt.u32.totalorder %s358_s15, %s551_s6 }
  0x5a   : > { %p360_p8 = pnand %p359_p5, %p604_p11 }
  0x5b   : > { %p365_p3 = por %p364_p1, %p363_p0 }
  0x5c   : > { %p361_p9 = pneg %p360_p8 }
  0x5d   : > { %p367_p12 = por %p366_p6, %p365_p3 }
  0x5f   : > { %p368_p13 = pnand %p367_p12, %p361_p9 }
  0x61   : > { %371 = shalt.err (!%p368_p13)
}
  0x62   : > { %268 = dma.vmem_to_hbm [thread:$0]  (%p604_p11), %s546_s3, 128, %s551_s6, %s171_s7  }
  0x63 PF: > { %s196_s26 = sand.u32 1, %s398_s11   ;;  %p605_p7 = scmp.ne.s32.totalorder %s600_s23, 0 }
  0x64   : > { %p606_p10 = scmp.ge.s32.totalorder %s410_s14, 2  ;;  %s197_s27 = scalar_lea.sflag [#allocation5], %s196_s26 }
  0x66   : > { %p275_p2 = pnand %p606_p10, %p605_p7 }
  0x68   : > { %393 = dma.done.wait (!%p275_p2), %s197_s27, 128  }
  0x69   : > { %395 = vsyncadd (!%p275_p2), %s197_s27, 4294967168  ;;  %p16_p4 = scmp.ge.s32.totalorder %s457_s16, 4   ;;  %s607_s11 = smov %s402_s12 }
  0x6a   : > { %s608_s12 = smov %s406_s13  ;;  %s609_s13 = smov %s469_s19 }
  0x6b   : > { %s610_s14 = smov %s457_s16  ;;  %18 = sbr.rel (!%p16_p4) target bundleno = 7 (0x7), region = 73 }
  0x72   :  { %202 = vsyncpa [#allocation4], 1 }
  0x73   :  { %204 = vsyncpa [#allocation4 + $0x1], 1 }
  0x74   :  { %205 = vsyncpa [#allocation5], 1 }
  0x75   :  { %207 = vsyncpa [#allocation5 + $0x1], 1 }

</bundles_post_ra>
